<compile_context>
chip_gen: v7x
topology: tpu7x:2x2x1
jax: 0.10.0
libtpu: 0.0.40
codegen_flags: <defaults>
</compile_context>

<pallas_src>
import math
import functools

import jax
import jax.numpy as jnp
from jax import lax
from jax.experimental import pallas as pl
from jax.experimental.pallas import tpu as pltpu

_MASK_VALUE = -1e30        # finite "minus infinity": every row sees at least the diagonal key


@functools.lru_cache(maxsize=None)
def _vmem_limit_bytes():
    # v5e/v6e: 128 MiB VMEM per core, v7x: 64 MiB.  Budget half the physical capacity (capped)
    # so XLA keeps scoped-VMEM headroom for surrounding fusions on every generation.
    try:
        cap = int(pltpu.get_tpu_info().vmem_capacity_bytes)
        return min(cap // 2, 96 * 1024 * 1024)
    except Exception:
        return 32 * 1024 * 1024


def _sublane_quantum(dtype):
    # dtype-aware second-minor quantum: 8 for 4-byte, 16 for bf16, 32 for int8.
    return {4: 8, 2: 16, 1: 32}.get(jnp.dtype(dtype).itemsize, 8)


def _pick_tile(dim, preferred, quantum):
    """Largest divisor of `dim` that is <= `preferred` and a multiple of `quantum`; else `dim`.

    The full-dim fallback is always layout-legal (block == array dim).
    # TODO(synk): for very large non-divisible dims, use a cdiv grid with masked edge tiles.
    """
    if dim <= preferred:
        return dim
    t = (preferred // quantum) * quantum
    while t >= quantum:
        if dim % t == 0:
            return t
        t -= quantum
    return dim


# ------------------------------ tiled matmul kernel ------------------------------

def _matmul_kernel(x_ref, w_ref, o_ref, acc_ref):
    @pl.when(pl.program_id(2) == 0)
    def _init():
        acc_ref[...] = jnp.zeros_like(acc_ref)

    acc_ref[...] += jnp.dot(x_ref[...], w_ref[...], preferred_element_type=jnp.float32)

    @pl.when(pl.program_id(2) == pl.num_programs(2) - 1)
    def _store():
        o_ref[...] = acc_ref[...].astype(o_ref.dtype)


def tiled_matmul(x, w, *, tm=512, tn=512, tk=512):
    """(M, K) @ (K, N) -> (M, N): real grid, f32 accumulator, K innermost ('arbitrary')."""
    M, K = x.shape
    K2, N = w.shape
    assert K == K2
    tm = _pick_tile(M, tm, _sublane_quantum(x.dtype))
    tn = _pick_tile(N, tn, 128)
    tk = _pick_tile(K, tk, 128)
    return pl.pallas_call(
        _matmul_kernel,
        out_shape=jax.ShapeDtypeStruct((M, N), x.dtype),
        grid=(M // tm, N // tn, K // tk),
        in_specs=[
            pl.BlockSpec((tm, tk), lambda i, j, k: (i, k)),
            pl.BlockSpec((tk, tn), lambda i, j, k: (k, j)),
        ],
        out_specs=pl.BlockSpec((tm, tn), lambda i, j, k: (i, j)),
        scratch_shapes=[pltpu.VMEM((tm, tn), jnp.float32)],
        compiler_params=pltpu.CompilerParams(
            dimension_semantics=("parallel", "parallel", "arbitrary"),
            vmem_limit_bytes=_vmem_limit_bytes()),
    )(x, w)


# -------------------- flash attention with fused RoPE (causal, GQA) --------------------

def _swap_halves(x, half):
    # rotate_half's data movement ([x1, x2] -> [x2, x1]); the sign is pre-folded into sin.
    # (pltpu.roll could be used instead when head_dim is a multiple of 128 lanes.)
    return jnp.concatenate([x[:, half:], x[:, :half]], axis=1)


def _flash_attn_kernel(cos_q_ref, sin_q_ref, cos_k_ref, sin_k_ref,
                       q_ref, k_ref, v_ref, o_ref,
                       q_sc, m_sc, l_sc, acc_sc,
                       *, head_dim, n_head, n_kv_heads, tq, tk):
    group_size = n_head // n_kv_heads
    half = head_dim // 2
    qi = pl.program_id(1)
    ki = pl.program_id(2)
    last_valid = ((qi + 1) * tq - 1) // tk             # last KV tile with any visible key
    fully_visible = (ki + 1) * tk - 1 <= qi * tq       # tile entirely below the diagonal

    @pl.when(ki == 0)
    def _init():
        # RoPE the resident q tile once per (batch, q-tile); it stays in q_sc for all ki steps.
        cos_q = cos_q_ref[...]
        sin_q = sin_q_ref[...]
        for h in range(n_head):
            qh = q_ref[:, h * head_dim:(h + 1) * head_dim].astype(jnp.float32)
            roped = qh * cos_q + _swap_halves(qh, half) * sin_q
            q_sc[h] = roped.astype(q_sc.dtype)
        m_sc[...] = jnp.full_like(m_sc, -jnp.inf)
        l_sc[...] = jnp.zeros_like(l_sc)
        acc_sc[...] = jnp.zeros_like(acc_sc)

    def _tile_update(apply_mask):
        cos_k = cos_k_ref[...]
        sin_k = sin_k_ref[...]
        k_all = k_ref[...]
        v_all = v_ref[...]
        # RoPE each KV head once per tile; shared by all query heads of its group.
        k_heads = []
        v_heads = []
        for j in range(n_kv_heads):
            sl = slice(j * head_dim, (j + 1) * head_dim)
            kj = k_all[:, sl].astype(jnp.float32)
            kj = kj * cos_k + _swap_halves(kj, half) * sin_k
            k_heads.append(kj.astype(k_all.dtype))
            v_heads.append(v_all[:, sl])
        if apply_mask:   # only diagonal-straddling tiles pay for the iota/compare/select
            row = qi * tq + lax.broadcasted_iota(jnp.int32, (tq, tk), 0)
            col = ki * tk + lax.broadcasted_iota(jnp.int32, (tq, tk), 1)
            visible = col <= row
        for h in range(n_head):
            j = h // group_size
            s = lax.dot_general(q_sc[h], k_heads[j], (((1,), (1,)), ((), ())),
                                preferred_element_type=jnp.float32)
            if apply_mask:
                s = jnp.where(visible, s, _MASK_VALUE)
            m_prev = m_sc[h]
            m_new = jnp.maximum(m_prev, jnp.max(s, axis=-1, keepdims=True))
            alpha = jnp.exp(m_prev - m_new)
            p = jnp.exp(s - m_new)
            l_sc[h] = alpha * l_sc[h] + jnp.sum(p, axis=-1, keepdims=True)
            pv = lax.dot_general(p.astype(v_heads[j].dtype), v_heads[j],
                                 (((1,), (0,)), ((), ())),
                                 preferred_element_type=jnp.float32)
            acc_sc[h] = alpha * acc_sc[h] + pv
            m_sc[h] = m_new

    @pl.when(jnp.logical_and(ki <= last_valid, fully_visible))
    def _interior():
        _tile_update(apply_mask=False)

    @pl.when(jnp.logical_and(ki <= last_valid, jnp.logical_not(fully_visible)))
    def _diagonal():
        _tile_update(apply_mask=True)

    @pl.when(ki == last_valid)
    def _epilogue():
        parts = []
        for h in range(n_head):
            inv_l = pl.reciprocal(l_sc[h], approx=True)      # EUP, off the VALU slots
            parts.append(acc_sc[h] * inv_l)
        # single lane-dense (tq, n_head*head_dim) store of the whole output row-block
        o_ref[...] = jnp.concatenate(parts, axis=-1).astype(o_ref.dtype)


def flash_attention(q_arr, k_arr, v_arr, cos_table, sin_signed_table, *,
                    B, T, n_head, n_kv_heads, head_dim,
                    q_col_block=0, k_col_block=0, v_col_block=0,
                    tq=512, tk=512):
    """Causal GQA flash attention with fused RoPE, reading q/k/v from 2-D (B*T, .) arrays."""
    C = n_head * head_dim
    kv_dim = n_kv_heads * head_dim
    sq = _sublane_quantum(q_arr.dtype)
    tq = _pick_tile(T, tq, sq)
    tk = _pick_tile(T, min(tk, tq), sq)   # tk <= tq: less masked work on diagonal tiles
    # NOTE(v7x megacore): keep B * (T // tq) >= 2 so both TensorCores get parallel work.
    grid = (B, T // tq, T // tk)

    def q_map(b, qi, ki):
        return (b * (T // tq) + qi, q_col_block)

    def kv_map(col_block):
        def _map(b, qi, ki):
            last_valid = ((qi + 1) * tq - 1) // tk
            # clamp above-diagonal steps to the previous block index -> Pallas skips the DMA
            return (b * (T // tk) + jnp.minimum(ki, last_valid), col_block)
        return _map

    def table_q_map(b, qi, ki):
        return (qi, 0)

    def table_k_map(b, qi, ki):
        last_valid = ((qi + 1) * tq - 1) // tk
        return (jnp.minimum(ki, last_valid), 0)

    kernel = functools.partial(_flash_attn_kernel, head_dim=head_dim, n_head=n_head,
                               n_kv_heads=n_kv_heads, tq=tq, tk=tk)
    cos_t = cos_table[:T]
    sin_t = sin_signed_table[:T]
    return pl.pallas_call(
        kernel,
        out_shape=jax.ShapeDtypeStruct((B * T, C), q_arr.dtype),
        grid=grid,
        in_specs=[
            pl.BlockSpec((tq, head_dim), table_q_map),          # cos for query rows
            pl.BlockSpec((tq, head_dim), table_q_map),          # signed sin for query rows
            pl.BlockSpec((tk, head_dim), table_k_map),          # cos for key rows (clamped)
            pl.BlockSpec((tk, head_dim), table_k_map),          # signed sin for key rows
            pl.BlockSpec((tq, C), q_map),                       # q rows (resident across ki)
            pl.BlockSpec((tk, kv_dim), kv_map(k_col_block)),    # k rows (clamped)
            pl.BlockSpec((tk, kv_dim), kv_map(v_col_block)),    # v rows (clamped)
        ],
        out_specs=pl.BlockSpec((tq, C), q_map),
        scratch_shapes=[
            pltpu.VMEM((n_head, tq, head_dim), q_arr.dtype),    # RoPE'd (pre-scaled) q planes
            pltpu.VMEM((n_head, tq, 1), jnp.float32),           # running max m
            pltpu.VMEM((n_head, tq, 1), jnp.float32),           # running sum l
            pltpu.VMEM((n_head, tq, head_dim), jnp.float32),    # output accumulator planes
        ],
        compiler_params=pltpu.CompilerParams(
            dimension_semantics=("parallel", "parallel", "arbitrary"),
            vmem_limit_bytes=_vmem_limit_bytes()),
    )(cos_t, sin_t, cos_t, sin_t, q_arr, k_arr, v_arr)


# --------------------------------- setup & forward ---------------------------------

def precompute_rope(block_size, head_dim, rope_theta, dtype=jnp.float32):
    positions = jnp.arange(block_size, dtype=jnp.float32)
    thetas = 1.0 / rope_theta ** (
        jnp.arange(0, head_dim, 2, dtype=jnp.float32) / head_dim
    )
    pos_thetas = jnp.outer(positions, thetas)
    pos_thetas = jnp.concatenate([pos_thetas, pos_thetas], axis=-1)
    return jnp.cos(pos_thetas).astype(dtype), jnp.sin(pos_thetas).astype(dtype)


def prepare_params(params, n_head, n_kv_heads, head_dim, block_size, rope_theta, dtype):
    """One-time setup hoisted out of the forward: fold 1/sqrt(head_dim) into Wq, build the
    fused [Wq|Wk|Wv] weight, and bake the rotate_half sign into the sin table."""
    scale = 1.0 / math.sqrt(head_dim)
    wq_s = (params["wq"] * scale).astype(dtype)
    w_qkv = jnp.concatenate([wq_s, params["wk"], params["wv"]], axis=1).astype(dtype)
    cos, sin = precompute_rope(block_size, head_dim, rope_theta, jnp.float32)
    half = head_dim // 2
    sin_signed = jnp.concatenate([-sin[:, :half], sin[:, half:]], axis=-1)
    return {
        "w_qkv": w_qkv, "wq_s": wq_s, "wk": params["wk"], "wv": params["wv"],
        "wo": params["wo"], "cos": cos, "sin_signed": sin_signed,
    }


def mha_forward(x, prep, n_head, n_kv_heads, *, tq=512, tk=512):
    B, T, C = x.shape
    head_dim = C // n_head
    kv_dim = n_kv_heads * head_dim
    group_size = n_head // n_kv_heads
    x2d = x.reshape(B * T, C)

    # Fused path: attention indexes q/k/v inside the single (B*T, C+2*kv_dim) projection output
    # via column-block offsets (legal when each sub-width is a multiple of 128 lanes).
    if C % 128 == 0 and kv_dim % 128 == 0:
        qkv = tiled_matmul(x2d, prep["w_qkv"])
        attn = flash_attention(qkv, qkv, qkv, prep["cos"], prep["sin_signed"],
                               B=B, T=T, n_head=n_head, n_kv_heads=n_kv_heads,
                               head_dim=head_dim,
                               q_col_block=0, k_col_block=group_size,
                               v_col_block=group_size + 1, tq=tq, tk=tk)
    else:
        # Fallback for lane-unaligned widths (e.g. SmolLM2's C=576, kv_dim=192): separate
        # projections so every attention operand's block last dim equals its full array width.
        q2d = tiled_matmul(x2d, prep["wq_s"])
        k2d = tiled_matmul(x2d, prep["wk"])
        v2d = tiled_matmul(x2d, prep["wv"])
        attn = flash_attention(q2d, k2d, v2d, prep["cos"], prep["sin_signed"],
                               B=B, T=T, n_head=n_head, n_kv_heads=n_kv_heads,
                               head_dim=head_dim, tq=tq, tk=tk)

    return tiled_matmul(attn, prep["wo"]).reshape(B, T, C)


# ------------------------------- pure-JAX reference ----------------------------

def reference_mha(x, params, cos, sin, n_head, n_kv_heads):
    B, T, C = x.shape
    h = C // n_head
    g = n_head // n_kv_heads
    q = (x.reshape(B * T, C) @ params["wq"]).reshape(B, T, n_head, h).transpose(0, 2, 1, 3)
    k = (x.reshape(B * T, C) @ params["wk"]).reshape(B, T, n_kv_heads, h).transpose(0, 2, 1, 3)
    v = (x.reshape(B * T, C) @ params["wv"]).reshape(B, T, n_kv_heads, h).transpose(0, 2, 1, 3)

    def rope(t):
        t1, t2 = t[..., : h // 2], t[..., h // 2:]
        rot = jnp.concatenate([-t2, t1], axis=-1)
        return t * cos[:T] + rot * sin[:T]

    q, k = rope(q), rope(k)
    k = jnp.repeat(k, g, axis=1)
    v = jnp.repeat(v, g, axis=1)
    s = (q @ jnp.swapaxes(k, -1, -2)) / math.sqrt(h)
    mask = jnp.tril(jnp.ones((T, T), bool))
    s = jnp.where(mask, s, -jnp.inf)
    p = jax.nn.softmax(s, axis=-1)
    o = (p @ v).transpose(0, 2, 1, 3).reshape(B, T, C)
    return (o.reshape(B * T, C) @ params["wo"]).reshape(B, T, C)


# ------------------------------------ main -------------------------------------

if __name__ == "__main__":
    # Small config mirroring the SmolLM2 MHA structure (f32 for the check; real use would pass
    # bf16 — the kernels accumulate in f32 either way).  Shapes chosen so C and kv_dim are
    # 128-lane aligned (exercising the zero-copy fused-QKV path) and so the attention grid has
    # multiple KV tiles (exercising the skip/clamp/diagonal/interior paths).
    B, T = 2, 32
    n_embd, n_head, n_kv_heads = 256, 4, 2
    head_dim = n_embd // n_head          # 64
    block_size = 64
    rope_theta = 100000
    dtype = jnp.float32

    key = jax.random.PRNGKey(0)
    kx, kq, kk, kv, ko = jax.random.split(key, 5)
    lim = 1.0 / math.sqrt(n_embd)
    params = {
        "wq": jax.random.uniform(kq, (n_embd, n_embd), dtype, -lim, lim),
        "wk": jax.random.uniform(kk, (n_embd, n_kv_heads * head_dim), dtype, -lim, lim),
        "wv": jax.random.uniform(kv, (n_embd, n_kv_heads * head_dim), dtype, -lim, lim),
        "wo": jax.random.uniform(ko, (n_embd, n_embd), dtype, -lim, lim),
    }
    x = jax.random.normal(kx, (B, T, n_embd), dtype)

    prep = prepare_params(params, n_head, n_kv_heads, head_dim, block_size, rope_theta, dtype)
    cos, sin = precompute_rope(block_size, head_dim, rope_theta, dtype)

    # tq=16, tk=8 at T=32 so the online-softmax loop runs several KV tiles per query tile.
    out = jax.block_until_ready(mha_forward(x, prep, n_head, n_kv_heads, tq=16, tk=8))
    ref = reference_mha(x, params, cos, sin, n_head, n_kv_heads)

    assert out.shape == (B, T, n_embd)
    err = float(jnp.max(jnp.abs(out - ref)))
    assert jnp.allclose(out, ref, atol=1e-2, rtol=1e-2), err
    print("KERNEL_OK")
</pallas_src>

<mosaic_0001>
module attributes {stable_mosaic.version = 11 : i64} {
  func.func @_matmul_kernel(%arg0: i32, %arg1: i32, %arg2: i32, %arg3: memref<64x256xf32, #tpu.memory_space<vmem>>, %arg4: memref<256x512xf32, #tpu.memory_space<vmem>>, %arg5: memref<64x512xf32, #tpu.memory_space<vmem>>, %arg6: memref<64x512xf32, #tpu.memory_space<vmem>>) attributes {dimension_semantics = [#tpu.dimension_semantics<parallel>, #tpu.dimension_semantics<parallel>, #tpu.dimension_semantics<arbitrary>], iteration_bounds = array<i64: 1, 1, 1>, scalar_prefetch = 0 : i64, scratch_operands = 1 : i64, tpu.core_type = #tpu.core_type<tc>, window_params = [{transform_indices = @transform_0, window_bounds = array<i64: 64, 256>}, {transform_indices = @transform_1, window_bounds = array<i64: 256, 512>}, {transform_indices = @transform_2, window_bounds = array<i64: 64, 512>}]} {
    %c0_i32 = arith.constant 0 : i32
    %0 = arith.cmpi eq, %arg2, %c0_i32 : i32
    %1 = arith.extui %0 : i1 to i32
    %c0_i32_0 = arith.constant 0 : i32
    %2 = arith.cmpi ne, %1, %c0_i32_0 : i32
    scf.if %2 {
      %cst_10 = arith.constant 0.000000e+00 : f32
      %12 = vector.broadcast %cst_10 : f32 to vector<64x512xf32>
      %c0_11 = arith.constant 0 : index
      %c0_12 = arith.constant 0 : index
      %13 = vector.load %arg6[%c0_11, %c0_12] : memref<64x512xf32, #tpu.memory_space<vmem>>, vector<64x512xf32>
      tpu.vector_store %arg6[%c0_11, %c0_12], %12 {strides = array<i32>} : memref<64x512xf32, #tpu.memory_space<vmem>>, vector<64x512xf32>,
    } else {
    }
    %c0 = arith.constant 0 : index
    %c0_1 = arith.constant 0 : index
    %3 = vector.load %arg6[%c0, %c0_1] : memref<64x512xf32, #tpu.memory_space<vmem>>, vector<64x512xf32>
    %c0_2 = arith.constant 0 : index
    %c0_3 = arith.constant 0 : index
    %4 = vector.load %arg3[%c0_2, %c0_3] : memref<64x256xf32, #tpu.memory_space<vmem>>, vector<64x256xf32>
    %c0_4 = arith.constant 0 : index
    %c0_5 = arith.constant 0 : index
    %5 = vector.load %arg4[%c0_4, %c0_5] : memref<256x512xf32, #tpu.memory_space<vmem>>, vector<256x512xf32>
    %cst = arith.constant dense<0.000000e+00> : vector<64x512xf32>
    %6 = tpu.matmul %4, %5, %cst {dimension_numbers = #tpu.dot_dimension_numbers<[1], [0], [0], [1], [0, 0, 1, 1], [], []>} : vector<64x256xf32>, vector<256x512xf32>, vector<64x512xf32> -> vector<64x512xf32>
    %7 = arith.addf %3, %6 : vector<64x512xf32>
    %c0_6 = arith.constant 0 : index
    %c0_7 = arith.constant 0 : index
    %8 = vector.load %arg6[%c0_6, %c0_7] : memref<64x512xf32, #tpu.memory_space<vmem>>, vector<64x512xf32>
    tpu.vector_store %arg6[%c0_6, %c0_7], %7 {strides = array<i32>} : memref<64x512xf32, #tpu.memory_space<vmem>>, vector<64x512xf32>,
    %c0_i32_8 = arith.constant 0 : i32
    %9 = arith.cmpi eq, %arg2, %c0_i32_8 : i32
    %10 = arith.extui %9 : i1 to i32
    %c0_i32_9 = arith.constant 0 : i32
    %11 = arith.cmpi ne, %10, %c0_i32_9 : i32
    scf.if %11 {
      %c0_10 = arith.constant 0 : index
      %c0_11 = arith.constant 0 : index
      %12 = vector.load %arg6[%c0_10, %c0_11] : memref<64x512xf32, #tpu.memory_space<vmem>>, vector<64x512xf32>
      %c0_12 = arith.constant 0 : index
      %c0_13 = arith.constant 0 : index
      %13 = vector.load %arg5[%c0_12, %c0_13] : memref<64x512xf32, #tpu.memory_space<vmem>>, vector<64x512xf32>
      tpu.vector_store %arg5[%c0_12, %c0_13], %12 {strides = array<i32>} : memref<64x512xf32, #tpu.memory_space<vmem>>, vector<64x512xf32>,
    } else {
    }
    return
  }
  func.func @transform_0(%arg0: i32, %arg1: i32, %arg2: i32) -> (i32, i32) {
    %c0_i32 = arith.constant 0 : i32
    return %arg0, %arg2 : i32, i32
  }
  func.func @transform_1(%arg0: i32, %arg1: i32, %arg2: i32) -> (i32, i32) {
    %c0_i32 = arith.constant 0 : i32
    return %arg2, %arg1 : i32, i32
  }
  func.func @transform_2(%arg0: i32, %arg1: i32, %arg2: i32) -> (i32, i32) {
    %c0_i32 = arith.constant 0 : i32
    return %arg0, %arg1 : i32, i32
  }
}

</mosaic_0001>

<bundles_post_ra>
// kernel: tpu_custom_call.1
= control target key start
LH: loop header
LB: loop body
LE: loop exit
PB: predicated region body
PF: predicated region fallthrough
CT: control target
= control target key end

     0   :  { %7 = vsyncpa [#allocation4], 0  ;;  %s898_s0 = inlined_call_operand.hbm [shape: f32[64,256], index: 0, kind: input, shape index: {}]   ;;  %s899_s1 = inlined_call_operand.hbm [shape: f32[256,512], index: 1, kind: input, shape index: {}]   ;;  %s900_s2 = inlined_call_operand.hbm [shape: f32[64,512], index: 2, kind: output, shape index: {}]  }
   0x1   :  { %8 = vsyncpa [#allocation7], 0 }
   0x2   :  { %9 = vsyncpa [#allocation5], 0  ;;  %s834_s9 = smov [#allocation3]   ;;  %s762_s13 = scalar_lea.hbm %s898_s0, 2048 }
   0x3   :  { %s15_s10 = sshll.u32 %s834_s9, 4  ;;  %p763_p0 = scmp.ne.s32.totalorder %s898_s0, %s762_s13  ;;  %s16_s10 = int_to_ptr.vmem [resolvable:$true] %s15_s10 }
   0x4   :  { %p766_p1 = scmp.lt.u32.totalorder %s762_s13, %s898_s0 }
   0x6   :  { %p768_p2 = pnand %p766_p1, %p763_p0 }
   0x8   :  { %771 = shalt.err (!%p768_p2)
}
   0x9   :  { %s772_s18 = scalar_lea.vmem %s16_s10, 2048  ;;  %p777_p4 = scmp.lt.s32.totalorder %s16_s10, %s16_s10 }
   0xa   :  { %p773_p3 = scmp.ne.s32.totalorder %s16_s10, %s772_s18  ;;  %p778_p5 = scmp.lt.s32.totalorder %s772_s18, %s772_s18 }
   0xc   :  { %p779_p6 = por %p778_p5, %p777_p4 }
   0xe   :  { %p780_p7 = pnand %p779_p6, %p773_p3 }
  0x10   :  { %783 = shalt.err (!%p780_p7)
}
  0x11   :  { %s835_s19 = smov 256   ;;  %s836_s20 = smov 16  }
  0x12   :  { %21 = dma.hbm_to_vmem [thread:$0]  %s898_s0, 2048, %s16_s10, [#allocation4], %s835_s19, %s835_s19, %s836_s20  }
  0x13   :  { %s837_s23 = smov [#allocation6]   ;;  %s784_s27 = scalar_lea.hbm %s899_s1, 16384 }
  0x14   :  { %s27_s24 = sshll.u32 %s837_s23, 4  ;;  %p785_p8 = scmp.ne.s32.totalorder %s899_s1, %s784_s27  ;;  %s28_s24 = int_to_ptr.vmem [resolvable:$true] %s27_s24 }
  0x15   :  { %p788_p9 = scmp.lt.u32.totalorder %s784_s27, %s899_s1 }
  0x17   :  { %p790_p10 = pnand %p788_p9, %p785_p8 }
  0x19   :  { %793 = shalt.err (!%p790_p10)
}
  0x1a   :  { %s794_s4 = scalar_lea.vmem %s28_s24, 16384  ;;  %p799_p12 = scmp.lt.s32.totalorder %s28_s24, %s28_s24 }
  0x1b   :  { %p795_p11 = scmp.ne.s32.totalorder %s28_s24, %s794_s4  ;;  %p800_p13 = scmp.lt.s32.totalorder %s794_s4, %s794_s4 }
  0x1d   :  { %p801_p0 = por %p800_p13, %p799_p12 }
  0x1f   :  { %p802_p1 = pnand %p801_p0, %p795_p11 }
  0x21   :  { %805 = shalt.err (!%p802_p1)
}
  0x22   :  { %s838_s0 = smov 512   ;;  %s839_s5 = smov 32  }
  0x23   :  { %33 = dma.hbm_to_vmem [thread:$0]  %s899_s1, 16384, %s28_s24, [#allocation7], %s838_s0, %s838_s0, %s839_s5  }
  0x24   :  { %828 = dma.done.wait [#allocation4], 2048  }
  0x25   :  { %829 = vsyncadd [#allocation4], 4294965248 }
  0x26   :  { %830 = dma.done.wait [#allocation7], 16384  }
  0x27   :  { %831 = vsyncadd [#allocation7], 4294950912  ;;  %v125_v0 = vld [vmem:[#allocation6 + $0x8] sm:$0xff]  ;;  %v127_v2 = vld [vmem:[#allocation6 + $0x18] sm:$0xff]  ;;  %s840_s1 = smov [#allocation8]  }
  0x28   :  { %v129_v1 = vld [vmem:[#allocation6 + $0x28] sm:$0xff]  ;;  %v131_v4 = vld [vmem:[#allocation6 + $0x38] sm:$0xff]  ;;  %v124_v5 = vld [vmem:[#allocation6] sm:$0xff]  ;;  %s614_s8 = sshll.u32 %s840_s1, 4  ;;  %s615_s8 = int_to_ptr.vmem [resolvable:$true] %s614_s8 }
  0x29   :  { %v627_v3 = vpack.c.bf16 %v129_v1, %v125_v0  ;;  %v128_v6 = vld [vmem:[#allocation6 + $0x20] sm:$0xff]  ;;  %v691_v7 = vpack.c.bf16 %v131_v4, %v127_v2  ;;  %v126_v9 = vld [vmem:[#allocation6 + $0x10] sm:$0xff]  ;;  %v133_v11 = vld [vmem:[#allocation6 + $0x48] sm:$0xff]  ;;  %s806_s9 = scalar_lea.vmem %s615_s8, 4096  ;;  %p811_p3 = scmp.lt.s32.totalorder %s615_s8, %s615_s8 }
  0x2a   :  { %v629_v8 = vpack.c.bf16 %v128_v6, %v124_v5  ;;  %v130_v10 = vld [vmem:[#allocation6 + $0x30] sm:$0xff]  ;;  %v137_v13 = vld [vmem:[#allocation6 + $0x68] sm:$0xff]  ;;  %v135_v14 = vld [vmem:[#allocation6 + $0x58] sm:$0xff]  ;;  %p807_p2 = scmp.ne.s32.totalorder %s615_s8, %s806_s9  ;;  %p812_p4 = scmp.lt.s32.totalorder %s806_s9, %s806_s9 }
  0x2b   :  { %628 = vmatprep.subr.bf16.mxu0 %v627_v3  ;;  %v693_v12 = vpack.c.bf16 %v130_v10, %v126_v9  ;;  %v139_v15 = vld [vmem:[#allocation6 + $0x78] sm:$0xff]  ;;  %692 = vmatprep.subr.bf16.mxu1 %v691_v7  ;;  %v631_v16 = vpack.c.bf16 %v137_v13, %v133_v11  ;;  %v132_v18 = vld [vmem:[#allocation6 + $0x40] sm:$0xff]  ;;  %v134_v20 = vld [vmem:[#allocation6 + $0x50] sm:$0xff] }
  0x2c   :  { %630 = vmatpush1.bf16.msra.mxu0 %v629_v8  ;;  %v695_v17 = vpack.c.bf16 %v139_v15, %v135_v14  ;;  %v136_v19 = vld [vmem:[#allocation6 + $0x60] sm:$0xff]  ;;  %v138_v22 = vld [vmem:[#allocation6 + $0x70] sm:$0xff]  ;;  %v141_v23 = vld [vmem:[#allocation6 + $0x88] sm:$0xff]  ;;  %p813_p5 = por %p812_p4, %p811_p3 }
  0x2d   :  { %694 = vmatpush1.bf16.msra.mxu1 %v693_v12  ;;  %v633_v21 = vpack.c.bf16 %v136_v19, %v132_v18  ;;  %v145_v24 = vld [vmem:[#allocation6 + $0xa8] sm:$0xff]  ;;  %632 = vmatprep.subr.bf16.mxu0 %v631_v16  ;;  %v697_v25 = vpack.c.bf16 %v138_v22, %v134_v20  ;;  %v143_v27 = vld [vmem:[#allocation6 + $0x98] sm:$0xff]  ;;  %v140_v29 = vld [vmem:[#allocation6 + $0x80] sm:$0xff] }
  0x2e   :  { %696 = vmatprep.subr.bf16.mxu1 %v695_v17  ;;  %v635_v26 = vpack.c.bf16 %v145_v24, %v141_v23  ;;  %v147_v28 = vld [vmem:[#allocation6 + $0xb8] sm:$0xff]  ;;  %v144_v31 = vld [vmem:[#allocation6 + $0xa0] sm:$0xff]  ;;  %v142_v32 = vld [vmem:[#allocation6 + $0x90] sm:$0xff]  ;;  %p814_p6 = pnand %p813_p5, %p807_p2 }
  0x2f   :  { %v699_v30 = vpack.c.bf16 %v147_v28, %v143_v27  ;;  %v146_v33 = vld [vmem:[#allocation6 + $0xb0] sm:$0xff]  ;;  %v637_v34 = vpack.c.bf16 %v144_v31, %v140_v29  ;;  %v149_v35 = vld [vmem:[#allocation6 + $0xc8] sm:$0xff]  ;;  %v151_v37 = vld [vmem:[#allocation6 + $0xd8] sm:$0xff] }
  0x30   :  { %634 = vmatpush1.bf16.msra.mxu0 %v633_v21  ;;  %v153_v36 = vld [vmem:[#allocation6 + $0xe8] sm:$0xff]  ;;  %v701_v38 = vpack.c.bf16 %v146_v33, %v142_v32  ;;  %v155_v40 = vld [vmem:[#allocation6 + $0xf8] sm:$0xff]  ;;  %v148_v41 = vld [vmem:[#allocation6 + $0xc0] sm:$0xff] }
  0x31   :  { %698 = vmatpush1.bf16.msra.mxu1 %v697_v25  ;;  %636 = vmatprep.subr.bf16.mxu0 %v635_v26  ;;  %v639_v39 = vpack.c.bf16 %v153_v36, %v149_v35  ;;  %v152_v42 = vld [vmem:[#allocation6 + $0xe0] sm:$0xff]  ;;  %v703_v43 = vpack.c.bf16 %v155_v40, %v151_v37  ;;  %v150_v44 = vld [vmem:[#allocation6 + $0xd0] sm:$0xff]  ;;  %v157_v46 = vld [vmem:[#allocation6 + $0x108] sm:$0xff] }
  0x32   :  { %700 = vmatprep.subr.bf16.mxu1 %v699_v30  ;;  %v154_v45 = vld [vmem:[#allocation6 + $0xf0] sm:$0xff]  ;;  %v161_v47 = vld [vmem:[#allocation6 + $0x128] sm:$0xff]  ;;  %v159_v48 = vld [vmem:[#allocation6 + $0x118] sm:$0xff]  ;;  %v641_v50 = vpack.c.bf16 %v152_v42, %v148_v41 }
  0x33   :  { %v163_v49 = vld [vmem:[#allocation6 + $0x138] sm:$0xff]  ;;  %v705_v51 = vpack.c.bf16 %v154_v45, %v150_v44  ;;  %v643_v52 = vpack.c.bf16 %v161_v47, %v157_v46  ;;  %v156_v53 = vld [vmem:[#allocation6 + $0x100] sm:$0xff]  ;;  %v158_v55 = vld [vmem:[#allocation6 + $0x110] sm:$0xff] }
  0x34   :  { %638 = vmatpush1.bf16.msra.mxu0 %v637_v34  ;;  %v160_v54 = vld [vmem:[#allocation6 + $0x120] sm:$0xff]  ;;  %v707_v56 = vpack.c.bf16 %v163_v49, %v159_v48  ;;  %v162_v57 = vld [vmem:[#allocation6 + $0x130] sm:$0xff]  ;;  %v165_v58 = vld [vmem:[#allocation6 + $0x148] sm:$0xff] }
  0x35   :  { %702 = vmatpush1.bf16.msra.mxu1 %v701_v38  ;;  %640 = vmatprep.subr.bf16.mxu0 %v639_v39  ;;  %v169_v59 = vld [vmem:[#allocation6 + $0x168] sm:$0xff]  ;;  %v167_v60 = vld [vmem:[#allocation6 + $0x158] sm:$0xff]  ;;  %v645_v62 = vpack.c.bf16 %v160_v54, %v156_v53  ;;  %v709_v63 = vpack.c.bf16 %v162_v57, %v158_v55  ;;  %v164_v1 = vld [vmem:[#allocation6 + $0x140] sm:$0xff] }
  0x36   :  { %704 = vmatprep.subr.bf16.mxu1 %v703_v43  ;;  %v171_v61 = vld [vmem:[#allocation6 + $0x178] sm:$0xff]  ;;  %v647_v0 = vpack.c.bf16 %v169_v59, %v165_v58  ;;  %v168_v2 = vld [vmem:[#allocation6 + $0x160] sm:$0xff]  ;;  %v166_v3 = vld [vmem:[#allocation6 + $0x150] sm:$0xff] }
  0x37   :  { %v711_v4 = vpack.c.bf16 %v171_v61, %v167_v60  ;;  %v170_v5 = vld [vmem:[#allocation6 + $0x170] sm:$0xff]  ;;  %v173_v6 = vld [vmem:[#allocation6 + $0x188] sm:$0xff]  ;;  %v175_v8 = vld [vmem:[#allocation6 + $0x198] sm:$0xff]  ;;  %v649_v10 = vpack.c.bf16 %v168_v2, %v164_v1 }
  0x38   :  { %642 = vmatpush1.bf16.msra.mxu0 %v641_v50  ;;  %v177_v7 = vld [vmem:[#allocation6 + $0x1a8] sm:$0xff]  ;;  %v179_v9 = vld [vmem:[#allocation6 + $0x1b8] sm:$0xff]  ;;  %v713_v11 = vpack.c.bf16 %v170_v5, %v166_v3  ;;  %v172_v13 = vld [vmem:[#allocation6 + $0x180] sm:$0xff] }
  0x39   :  { %706 = vmatpush1.bf16.msra.mxu1 %v705_v51  ;;  %644 = vmatprep.subr.bf16.mxu0 %v643_v52  ;;  %v651_v12 = vpack.c.bf16 %v177_v7, %v173_v6  ;;  %v176_v14 = vld [vmem:[#allocation6 + $0x1a0] sm:$0xff]  ;;  %v174_v15 = vld [vmem:[#allocation6 + $0x190] sm:$0xff]  ;;  %v715_v16 = vpack.c.bf16 %v179_v9, %v175_v8  ;;  %v181_v18 = vld [vmem:[#allocation6 + $0x1c8] sm:$0xff] }
  0x3a   :  { %708 = vmatprep.subr.bf16.mxu1 %v707_v56  ;;  %v178_v17 = vld [vmem:[#allocation6 + $0x1b0] sm:$0xff]  ;;  %v185_v19 = vld [vmem:[#allocation6 + $0x1e8] sm:$0xff]  ;;  %v183_v20 = vld [vmem:[#allocation6 + $0x1d8] sm:$0xff]  ;;  %v653_v22 = vpack.c.bf16 %v176_v14, %v172_v13 }
  0x3b   :  { %v187_v21 = vld [vmem:[#allocation6 + $0x1f8] sm:$0xff]  ;;  %v717_v23 = vpack.c.bf16 %v178_v17, %v174_v15  ;;  %v655_v24 = vpack.c.bf16 %v185_v19, %v181_v18  ;;  %v180_v25 = vld [vmem:[#allocation6 + $0x1c0] sm:$0xff]  ;;  %v182_v27 = vld [vmem:[#allocation6 + $0x1d0] sm:$0xff] }
  0x3c   :  { %646 = vmatpush1.bf16.msra.mxu0 %v645_v62  ;;  %v184_v26 = vld [vmem:[#allocation6 + $0x1e0] sm:$0xff]  ;;  %v719_v28 = vpack.c.bf16 %v187_v21, %v183_v20  ;;  %v186_v29 = vld [vmem:[#allocation6 + $0x1f0] sm:$0xff]  ;;  %v189_v30 = vld [vmem:[#allocation6 + $0x208] sm:$0xff] }
  0x3d   :  { %710 = vmatpush1.bf16.msra.mxu1 %v709_v63  ;;  %648 = vmatprep.subr.bf16.mxu0 %v647_v0  ;;  %v193_v31 = vld [vmem:[#allocation6 + $0x228] sm:$0xff]  ;;  %v191_v32 = vld [vmem:[#allocation6 + $0x218] sm:$0xff]  ;;  %v657_v34 = vpack.c.bf16 %v184_v26, %v180_v25  ;;  %v721_v35 = vpack.c.bf16 %v186_v29, %v182_v27  ;;  %v188_v37 = vld [vmem:[#allocation6 + $0x200] sm:$0xff] }
  0x3e   :  { %712 = vmatprep.subr.bf16.mxu1 %v711_v4  ;;  %v195_v33 = vld [vmem:[#allocation6 + $0x238] sm:$0xff]  ;;  %v659_v36 = vpack.c.bf16 %v193_v31, %v189_v30  ;;  %v192_v38 = vld [vmem:[#allocation6 + $0x220] sm:$0xff]  ;;  %v190_v39 = vld [vmem:[#allocation6 + $0x210] sm:$0xff] }
  0x3f   :  { %v723_v40 = vpack.c.bf16 %v195_v33, %v191_v32  ;;  %v194_v41 = vld [vmem:[#allocation6 + $0x230] sm:$0xff]  ;;  %v197_v42 = vld [vmem:[#allocation6 + $0x248] sm:$0xff]  ;;  %v199_v44 = vld [vmem:[#allocation6 + $0x258] sm:$0xff]  ;;  %v661_v46 = vpack.c.bf16 %v192_v38, %v188_v37 }
  0x40   :  { %650 = vmatpush1.bf16.msra.mxu0 %v649_v10  ;;  %v201_v43 = vld [vmem:[#allocation6 + $0x268] sm:$0xff]  ;;  %v203_v45 = vld [vmem:[#allocation6 + $0x278] sm:$0xff]  ;;  %v725_v47 = vpack.c.bf16 %v194_v41, %v190_v39  ;;  %v196_v49 = vld [vmem:[#allocation6 + $0x240] sm:$0xff] }
  0x41   :  { %714 = vmatpush1.bf16.msra.mxu1 %v713_v11  ;;  %652 = vmatprep.subr.bf16.mxu0 %v651_v12  ;;  %v663_v48 = vpack.c.bf16 %v201_v43, %v197_v42  ;;  %v200_v50 = vld [vmem:[#allocation6 + $0x260] sm:$0xff]  ;;  %v198_v51 = vld [vmem:[#allocation6 + $0x250] sm:$0xff]  ;;  %v727_v52 = vpack.c.bf16 %v203_v45, %v199_v44  ;;  %v205_v54 = vld [vmem:[#allocation6 + $0x288] sm:$0xff] }
  0x42   :  { %716 = vmatprep.subr.bf16.mxu1 %v715_v16  ;;  %v202_v53 = vld [vmem:[#allocation6 + $0x270] sm:$0xff]  ;;  %v209_v55 = vld [vmem:[#allocation6 + $0x2a8] sm:$0xff]  ;;  %v207_v56 = vld [vmem:[#allocation6 + $0x298] sm:$0xff]  ;;  %v665_v58 = vpack.c.bf16 %v200_v50, %v196_v49 }
  0x43   :  { %v211_v57 = vld [vmem:[#allocation6 + $0x2b8] sm:$0xff]  ;;  %v729_v59 = vpack.c.bf16 %v202_v53, %v198_v51  ;;  %v667_v60 = vpack.c.bf16 %v209_v55, %v205_v54  ;;  %v204_v61 = vld [vmem:[#allocation6 + $0x280] sm:$0xff]  ;;  %v206_v63 = vld [vmem:[#allocation6 + $0x290] sm:$0xff] }
  0x44   :  { %654 = vmatpush1.bf16.msra.mxu0 %v653_v22  ;;  %v208_v62 = vld [vmem:[#allocation6 + $0x2a0] sm:$0xff]  ;;  %v731_v0 = vpack.c.bf16 %v211_v57, %v207_v56  ;;  %v210_v1 = vld [vmem:[#allocation6 + $0x2b0] sm:$0xff]  ;;  %v213_v2 = vld [vmem:[#allocation6 + $0x2c8] sm:$0xff] }
  0x45   :  { %718 = vmatpush1.bf16.msra.mxu1 %v717_v23  ;;  %656 = vmatprep.subr.bf16.mxu0 %v655_v24  ;;  %v217_v3 = vld [vmem:[#allocation6 + $0x2e8] sm:$0xff]  ;;  %v215_v4 = vld [vmem:[#allocation6 + $0x2d8] sm:$0xff]  ;;  %v669_v6 = vpack.c.bf16 %v208_v62, %v204_v61  ;;  %v212_v7 = vld [vmem:[#allocation6 + $0x2c0] sm:$0xff]  ;;  %v733_v8 = vpack.c.bf16 %v210_v1, %v206_v63 }
  0x46   :  { %720 = vmatprep.subr.bf16.mxu1 %v719_v28  ;;  %v219_v5 = vld [vmem:[#allocation6 + $0x2f8] sm:$0xff]  ;;  %v671_v9 = vpack.c.bf16 %v217_v3, %v213_v2  ;;  %v216_v10 = vld [vmem:[#allocation6 + $0x2e0] sm:$0xff]  ;;  %v214_v11 = vld [vmem:[#allocation6 + $0x2d0] sm:$0xff] }
  0x47   :  { %v218_v12 = vld [vmem:[#allocation6 + $0x2f0] sm:$0xff]  ;;  %v735_v13 = vpack.c.bf16 %v219_v5, %v215_v4  ;;  %v221_v14 = vld [vmem:[#allocation6 + $0x308] sm:$0xff]  ;;  %v223_v17 = vld [vmem:[#allocation6 + $0x318] sm:$0xff]  ;;  %v673_v19 = vpack.c.bf16 %v216_v10, %v212_v7 }
  0x48   :  { %658 = vmatpush1.bf16.msra.mxu0 %v657_v34  ;;  %v225_v15 = vld [vmem:[#allocation6 + $0x328] sm:$0xff]  ;;  %v227_v18 = vld [vmem:[#allocation6 + $0x338] sm:$0xff]  ;;  %v737_v20 = vpack.c.bf16 %v218_v12, %v214_v11  ;;  %v220_v22 = vld [vmem:[#allocation6 + $0x300] sm:$0xff] }
  0x49   :  { %722 = vmatpush1.bf16.msra.mxu1 %v721_v35  ;;  %660 = vmatprep.subr.bf16.mxu0 %v659_v36  ;;  %v109_v16 = vld [vmem:[#allocation3 + $0x8] sm:$0xff]  ;;  %v675_v21 = vpack.c.bf16 %v225_v15, %v221_v14  ;;  %v224_v23 = vld [vmem:[#allocation6 + $0x320] sm:$0xff]  ;;  %v222_v24 = vld [vmem:[#allocation6 + $0x310] sm:$0xff]  ;;  %v739_v25 = vpack.c.bf16 %v227_v18, %v223_v17 }
  0x4a   :  { %724 = vmatprep.subr.bf16.mxu1 %v723_v40  ;;  %316 = vmatprep.mubr.f32.mxu0 %v109_v16  ;;  %v226_v26 = vld [vmem:[#allocation6 + $0x330] sm:$0xff]  ;;  %v229_v27 = vld [vmem:[#allocation6 + $0x348] sm:$0xff]  ;;  %v231_v29 = vld [vmem:[#allocation6 + $0x358] sm:$0xff]  ;;  %v677_v31 = vpack.c.bf16 %v224_v23, %v220_v22 }
  0x4b   :  { %429 = vmatprep.mubr.f32.mxu1 %v109_v16  ;;  %v233_v28 = vld [vmem:[#allocation6 + $0x368] sm:$0xff]  ;;  %v235_v30 = vld [vmem:[#allocation6 + $0x378] sm:$0xff]  ;;  %v741_v32 = vpack.c.bf16 %v226_v26, %v222_v24  ;;  %v228_v34 = vld [vmem:[#allocation6 + $0x340] sm:$0xff] }
  0x4c   :  { %662 = vmatpush1.bf16.msra.mxu0 %v661_v46  ;;  %v679_v33 = vpack.c.bf16 %v233_v28, %v229_v27  ;;  %v232_v35 = vld [vmem:[#allocation6 + $0x360] sm:$0xff]  ;;  %v230_v36 = vld [vmem:[#allocation6 + $0x350] sm:$0xff]  ;;  %v743_v37 = vpack.c.bf16 %v235_v30, %v231_v29  ;;  %v237_v39 = vld [vmem:[#allocation6 + $0x388] sm:$0xff] }
  0x4d   :  { %726 = vmatpush1.bf16.msra.mxu1 %v725_v47  ;;  %664 = vmatprep.subr.bf16.mxu0 %v663_v48  ;;  %v234_v38 = vld [vmem:[#allocation6 + $0x370] sm:$0xff]  ;;  %v241_v40 = vld [vmem:[#allocation6 + $0x3a8] sm:$0xff]  ;;  %v239_v41 = vld [vmem:[#allocation6 + $0x398] sm:$0xff]  ;;  %v681_v43 = vpack.c.bf16 %v232_v35, %v228_v34 }
  0x4e   :  { %728 = vmatprep.subr.bf16.mxu1 %v727_v52  ;;  %v243_v42 = vld [vmem:[#allocation6 + $0x3b8] sm:$0xff]  ;;  %v745_v44 = vpack.c.bf16 %v234_v38, %v230_v36  ;;  %v683_v45 = vpack.c.bf16 %v241_v40, %v237_v39  ;;  %v236_v46 = vld [vmem:[#allocation6 + $0x380] sm:$0xff]  ;;  %v238_v48 = vld [vmem:[#allocation6 + $0x390] sm:$0xff] }
  0x4f   :  { %v240_v47 = vld [vmem:[#allocation6 + $0x3a0] sm:$0xff]  ;;  %v747_v49 = vpack.c.bf16 %v243_v42, %v239_v41  ;;  %v242_v50 = vld [vmem:[#allocation6 + $0x3b0] sm:$0xff]  ;;  %v245_v51 = vld [vmem:[#allocation6 + $0x3c8] sm:$0xff] }
  0x50   :  { %666 = vmatpush1.bf16.msra.mxu0 %v665_v58  ;;  %v249_v52 = vld [vmem:[#allocation6 + $0x3e8] sm:$0xff]  ;;  %v247_v53 = vld [vmem:[#allocation6 + $0x3d8] sm:$0xff]  ;;  %v685_v55 = vpack.c.bf16 %v240_v47, %v236_v46  ;;  %v749_v56 = vpack.c.bf16 %v242_v50, %v238_v48  ;;  %v244_v58 = vld [vmem:[#allocation6 + $0x3c0] sm:$0xff] }
  0x51   :  { %730 = vmatpush1.bf16.msra.mxu1 %v729_v59  ;;  %668 = vmatprep.subr.bf16.mxu0 %v667_v60  ;;  %v251_v54 = vld [vmem:[#allocation6 + $0x3f8] sm:$0xff]  ;;  %v687_v57 = vpack.c.bf16 %v249_v52, %v245_v51  ;;  %v248_v59 = vld [vmem:[#allocation6 + $0x3e0] sm:$0xff]  ;;  %v246_v61 = vld [vmem:[#allocation6 + $0x3d0] sm:$0xff] }
  0x52   :  { %732 = vmatprep.subr.bf16.mxu1 %v731_v0  ;;  %v751_v60 = vpack.c.bf16 %v251_v54, %v247_v53  ;;  %v250_v62 = vld [vmem:[#allocation6 + $0x3f0] sm:$0xff]  ;;  %v689_v63 = vpack.c.bf16 %v248_v59, %v244_v58  ;;  %v108_v1 = vld [vmem:[#allocation3] sm:$0xff]  ;;  %v111_v2 = vld [vmem:[#allocation3 + $0x18] sm:$0xff] }
  0x53   :  { %v753_v0 = vpack.c.bf16 %v250_v62, %v246_v61  ;;  %v110_v3 = vld [vmem:[#allocation3 + $0x10] sm:$0xff]  ;;  %v113_v4 = vld [vmem:[#allocation3 + $0x28] sm:$0xff]  ;;  %v112_v5 = vld [vmem:[#allocation3 + $0x20] sm:$0xff] }
  0x54   :  { %670 = vmatpush1.bf16.msra.mxu0 %v669_v6  ;;  %v115_v6 = vld [vmem:[#allocation3 + $0x38] sm:$0xff]  ;;  %v114_v7 = vld [vmem:[#allocation3 + $0x30] sm:$0xff]  ;;  %v121_v12 = vld [vmem:[#allocation3 + $0x68] sm:$0xff] }
  0x55   :  { %734 = vmatpush1.bf16.msra.mxu1 %v733_v8  ;;  %672 = vmatprep.subr.bf16.mxu0 %v671_v9  ;;  %v117_v8 = vld [vmem:[#allocation3 + $0x48] sm:$0xff]  ;;  %v116_v9 = vld [vmem:[#allocation3 + $0x40] sm:$0xff]  ;;  %v119_v10 = vld [vmem:[#allocation3 + $0x58] sm:$0xff] }
  0x56   :  { %736 = vmatprep.subr.bf16.mxu1 %v735_v13  ;;  %v118_v11 = vld [vmem:[#allocation3 + $0x50] sm:$0xff]  ;;  %v120_v13 = vld [vmem:[#allocation3 + $0x60] sm:$0xff]  ;;  %v123_v14 = vld [vmem:[#allocation3 + $0x78] sm:$0xff] }
  0x57   :  { %v122_v15 = vld [vmem:[#allocation3 + $0x70] sm:$0xff] }
  0x58   :  { %674 = vmatpush1.bf16.msra.mxu0 %v673_v19 }
  0x59   :  { %738 = vmatpush1.bf16.msra.mxu1 %v737_v20  ;;  %676 = vmatprep.subr.bf16.mxu0 %v675_v21 }
  0x5a   :  { %740 = vmatprep.subr.bf16.mxu1 %v739_v25 }
  0x5c   :  { %678 = vmatpush1.bf16.msra.mxu0 %v677_v31 }
  0x5d   :  { %742 = vmatpush1.bf16.msra.mxu1 %v741_v32  ;;  %680 = vmatprep.subr.bf16.mxu0 %v679_v33 }
  0x5e   :  { %744 = vmatprep.subr.bf16.mxu1 %v743_v37 }
  0x60   :  { %682 = vmatpush1.bf16.msra.mxu0 %v681_v43 }
  0x61   :  { %746 = vmatpush1.bf16.msra.mxu1 %v745_v44  ;;  %684 = vmatprep.subr.bf16.mxu0 %v683_v45 }
  0x62   :  { %748 = vmatprep.subr.bf16.mxu1 %v747_v49 }
  0x64   :  { %686 = vmatpush1.bf16.msra.mxu0 %v685_v55 }
  0x65   :  { %750 = vmatpush1.bf16.msra.mxu1 %v749_v56  ;;  %688 = vmatprep.subr.bf16.mxu0 %v687_v57 }
  0x66   :  { %752 = vmatprep.subr.bf16.mxu1 %v751_v60 }
  0x68   :  { %690 = vmatpush1.bf16.msra.mxu0 %v689_v63 }
  0x69   :  { %754 = vmatpush1.bf16.msra.mxu1 %v753_v0 }
  0x6b   :  { %317 = vmatmul.mubr.f32.vlgmr.msra.gmra.mrb[0].mxu0 %v108_v1 }
  0x6c   :  { %430 = vmatmul.mubr.f32.vlgmr.msra.gmra.mrb[0].mxu1 %v108_v1  ;;  %322 = vmatprep.mubr.f32.mxu0 %v111_v2 }
  0x6d   :  { %435 = vmatprep.mubr.f32.mxu1 %v111_v2 }
  0x6f   :  { %323 = vmatmul.mubr.f32.gmra.mrb[2].mxu0 %v110_v3 }
  0x70   :  { %436 = vmatmul.mubr.f32.gmra.mrb[2].mxu1 %v110_v3  ;;  %328 = vmatprep.mubr.f32.mxu0 %v113_v4 }
  0x71   :  { %441 = vmatprep.mubr.f32.mxu1 %v113_v4 }
  0x73   :  { %329 = vmatmul.mubr.f32.gmra.mrb[4].mxu0 %v112_v5 }
  0x74   :  { %442 = vmatmul.mubr.f32.gmra.mrb[4].mxu1 %v112_v5  ;;  %334 = vmatprep.mubr.f32.mxu0 %v115_v6 }
  0x75   :  { %447 = vmatprep.mubr.f32.mxu1 %v115_v6 }
  0x77   :  { %335 = vmatmul.mubr.f32.gmra.mrb[6].mxu0 %v114_v7 }
  0x78   :  { %448 = vmatmul.mubr.f32.gmra.mrb[6].mxu1 %v114_v7  ;;  %340 = vmatprep.mubr.f32.mxu0 %v117_v8 }
  0x79   :  { %453 = vmatprep.mubr.f32.mxu1 %v117_v8 }
  0x7b   :  { %341 = vmatmul.mubr.f32.gmra.mrb[8].mxu0 %v116_v9 }
  0x7c   :  { %454 = vmatmul.mubr.f32.gmra.mrb[8].mxu1 %v116_v9  ;;  %346 = vmatprep.mubr.f32.mxu0 %v119_v10 }
  0x7d   :  { %459 = vmatprep.mubr.f32.mxu1 %v119_v10 }
  0x7f   :  { %347 = vmatmul.mubr.f32.gmra.mrb[10].mxu0 %v118_v11 }
  0x80   :  { %460 = vmatmul.mubr.f32.gmra.mrb[10].mxu1 %v118_v11  ;;  %352 = vmatprep.mubr.f32.mxu0 %v121_v12 }
  0x81   :  { %465 = vmatprep.mubr.f32.mxu1 %v121_v12 }
  0x83   :  { %353 = vmatmul.mubr.f32.gmra.mrb[12].mxu0 %v120_v13 }
  0x84   :  { %466 = vmatmul.mubr.f32.gmra.mrb[12].mxu1 %v120_v13  ;;  %358 = vmatprep.mubr.f32.mxu0 %v123_v14 }
  0x85   :  { %471 = vmatprep.mubr.f32.mxu1 %v123_v14 }
  0x87   :  { %359 = vmatmul.mubr.f32.gmra.mrb[14].mxu0 %v122_v15 }
  0x88   :  { %472 = vmatmul.mubr.f32.gmra.mrb[14].mxu1 %v122_v15 }
 0x13e   :  { %v318_v16 = vpop.f32.mrb[0].mxu0 }
 0x13f   :  { %577 = vst [vmem:[#allocation8] sm:$0xff] %v318_v16  ;;  %v431_v17 = vpop.f32.mrb[0].mxu1  ;;  %v320_v18 = vpop.f32.mrb[1].mxu0 }
 0x140   :  { %579 = vst [vmem:[#allocation8 + $0x10] sm:$0xff] %v431_v17  ;;  %578 = vst [vmem:[#allocation8 + $0x8] sm:$0xff] %v320_v18  ;;  %v433_v19 = vpop.f32.mrb[1].mxu1 }
 0x141   :  { %580 = vst [vmem:[#allocation8 + $0x18] sm:$0xff] %v433_v19 }
 0x142   :  { %v324_v20 = vpop.f32.mrb[2].mxu0 }
 0x143   :  { %581 = vst [vmem:[#allocation8 + $0x20] sm:$0xff] %v324_v20  ;;  %v437_v21 = vpop.f32.mrb[2].mxu1  ;;  %v326_v22 = vpop.f32.mrb[3].mxu0 }
 0x144   :  { %583 = vst [vmem:[#allocation8 + $0x30] sm:$0xff] %v437_v21  ;;  %582 = vst [vmem:[#allocation8 + $0x28] sm:$0xff] %v326_v22  ;;  %v439_v23 = vpop.f32.mrb[3].mxu1 }
 0x145   :  { %584 = vst [vmem:[#allocation8 + $0x38] sm:$0xff] %v439_v23 }
 0x146   :  { %v330_v24 = vpop.f32.mrb[4].mxu0 }
 0x147   :  { %585 = vst [vmem:[#allocation8 + $0x40] sm:$0xff] %v330_v24  ;;  %v443_v25 = vpop.f32.mrb[4].mxu1  ;;  %v332_v26 = vpop.f32.mrb[5].mxu0 }
 0x148   :  { %587 = vst [vmem:[#allocation8 + $0x50] sm:$0xff] %v443_v25  ;;  %586 = vst [vmem:[#allocation8 + $0x48] sm:$0xff] %v332_v26  ;;  %v445_v27 = vpop.f32.mrb[5].mxu1 }
 0x149   :  { %588 = vst [vmem:[#allocation8 + $0x58] sm:$0xff] %v445_v27 }
 0x14a   :  { %v336_v28 = vpop.f32.mrb[6].mxu0 }
 0x14b   :  { %589 = vst [vmem:[#allocation8 + $0x60] sm:$0xff] %v336_v28  ;;  %v449_v29 = vpop.f32.mrb[6].mxu1  ;;  %v338_v30 = vpop.f32.mrb[7].mxu0 }
 0x14c   :  { %591 = vst [vmem:[#allocation8 + $0x70] sm:$0xff] %v449_v29  ;;  %590 = vst [vmem:[#allocation8 + $0x68] sm:$0xff] %v338_v30  ;;  %v451_v31 = vpop.f32.mrb[7].mxu1 }
 0x14d   :  { %592 = vst [vmem:[#allocation8 + $0x78] sm:$0xff] %v451_v31 }
 0x14e   :  { %v342_v32 = vpop.f32.mrb[8].mxu0 }
 0x14f   :  { %593 = vst [vmem:[#allocation8 + $0x80] sm:$0xff] %v342_v32  ;;  %v455_v33 = vpop.f32.mrb[8].mxu1  ;;  %v344_v34 = vpop.f32.mrb[9].mxu0 }
 0x150   :  { %595 = vst [vmem:[#allocation8 + $0x90] sm:$0xff] %v455_v33  ;;  %594 = vst [vmem:[#allocation8 + $0x88] sm:$0xff] %v344_v34  ;;  %v457_v35 = vpop.f32.mrb[9].mxu1 }
 0x151   :  { %596 = vst [vmem:[#allocation8 + $0x98] sm:$0xff] %v457_v35 }
 0x152   :  { %v348_v36 = vpop.f32.mrb[10].mxu0 }
 0x153   :  { %597 = vst [vmem:[#allocation8 + $0xa0] sm:$0xff] %v348_v36  ;;  %v461_v37 = vpop.f32.mrb[10].mxu1  ;;  %v350_v38 = vpop.f32.mrb[11].mxu0 }
 0x154   :  { %599 = vst [vmem:[#allocation8 + $0xb0] sm:$0xff] %v461_v37  ;;  %598 = vst [vmem:[#allocation8 + $0xa8] sm:$0xff] %v350_v38  ;;  %v463_v39 = vpop.f32.mrb[11].mxu1 }
 0x155   :  { %600 = vst [vmem:[#allocation8 + $0xb8] sm:$0xff] %v463_v39 }
 0x156   :  { %v354_v40 = vpop.f32.mrb[12].mxu0 }
 0x157   :  { %601 = vst [vmem:[#allocation8 + $0xc0] sm:$0xff] %v354_v40  ;;  %v467_v41 = vpop.f32.mrb[12].mxu1  ;;  %v356_v42 = vpop.f32.mrb[13].mxu0 }
 0x158   :  { %603 = vst [vmem:[#allocation8 + $0xd0] sm:$0xff] %v467_v41  ;;  %602 = vst [vmem:[#allocation8 + $0xc8] sm:$0xff] %v356_v42  ;;  %v469_v43 = vpop.f32.mrb[13].mxu1 }
 0x159   :  { %604 = vst [vmem:[#allocation8 + $0xd8] sm:$0xff] %v469_v43 }
 0x15a   :  { %v360_v44 = vpop.f32.mrb[14].mxu0 }
 0x15b   :  { %605 = vst [vmem:[#allocation8 + $0xe0] sm:$0xff] %v360_v44  ;;  %v473_v45 = vpop.f32.mrb[14].mxu1  ;;  %v362_v46 = vpop.f32.mrb[15].mxu0 }
 0x15c   :  { %607 = vst [vmem:[#allocation8 + $0xf0] sm:$0xff] %v473_v45  ;;  %606 = vst [vmem:[#allocation8 + $0xe8] sm:$0xff] %v362_v46  ;;  %v475_v47 = vpop.f32.mrb[15].mxu1 }
 0x15d   :  { %608 = vst [vmem:[#allocation8 + $0xf8] sm:$0xff] %v475_v47 }
 0x15e   :  { %817 = shalt.err (!%p814_p6)
}
 0x15f   :  { %s818_s12 = scalar_lea.hbm %s900_s2, 4096 }
 0x160   :  { %p819_p7 = scmp.ne.s32.totalorder %s900_s2, %s818_s12  ;;  %p822_p8 = scmp.lt.u32.totalorder %s818_s12, %s900_s2 }
 0x162   :  { %p824_p9 = pnand %p822_p8, %p819_p7 }
 0x164   :  { %827 = shalt.err (!%p824_p9)
}
 0x165   :  { %620 = dma.vmem_to_hbm [thread:$0]  %s615_s8, 4096, %s900_s2, [#allocation5], %s838_s0, %s838_s0, %s839_s5  }
 0x166   :  { %832 = dma.done.wait [#allocation5], 4096  }
 0x167   :  { %833 = vsyncadd [#allocation5], 4294963200 }
 0x168   :  { %624 = vsyncpa [#allocation4], 1 }
 0x169   :  { %625 = vsyncpa [#allocation7], 1 }
 0x16a   :  { %626 = vsyncpa [#allocation5], 1 }

</bundles_post_ra>
